<compile_context>
chip_gen: v7x
topology: tpu7x:2x2x1
jax: 0.10.0
libtpu: 0.0.40
codegen_flags: <defaults>
</compile_context>

<pallas_src>
import functools

import jax
import jax.numpy as jnp
from jax.experimental import pallas as pl
from jax.experimental.pallas import tpu as pltpu


def _round_up(a: int, b: int) -> int:
    return (a + b - 1) // b * b


def _support_kernel(x_ref, w_ref, s_ref):
    # support[i] = x[i] @ W   (MXU, f32 accumulate)
    s_ref[...] = jnp.dot(x_ref[...], w_ref[...],
                         preferred_element_type=jnp.float32)


def _aggregate_kernel(adj_ref, s_ref, b_ref, o_ref, acc_ref):
    i = pl.program_id(0)
    k = pl.program_id(1)

    @pl.when(k == 0)
    def _():
        acc_ref[...] = jnp.zeros_like(acc_ref)

    # acc[i] += adj[i, k] @ support[k]   (MXU, f32 accumulate)
    acc_ref[...] += jnp.dot(adj_ref[...], s_ref[...],
                            preferred_element_type=jnp.float32)

    # Identity contribution: (adj + I) @ S == adj @ S + S.  The resident
    # support block is S[k]; when k == i (square node tiles) it is exactly
    # S[i], so add it here instead of materializing an identity matrix.
    @pl.when(k == i)
    def _():
        acc_ref[...] += s_ref[...]

    # Bias + ReLU exactly once, at the last reduction step.
    @pl.when(k == pl.num_programs(1) - 1)
    def _():
        o_ref[...] = jnp.maximum(acc_ref[...] + b_ref[...], 0.0).astype(o_ref.dtype)


@functools.partial(jax.jit, static_argnames=("node_tile",))
def gcn_forward(x, adj, w, b, *, node_tile: int = 256):
    """relu((adj + I) @ (x @ w) + b); dropout is identity (eval mode)."""
    n, nfeat = x.shape
    nclass = w.shape[1]

    # Lane-dense class dimension; node dimension padded to square tiles.
    cpad = _round_up(max(nclass, 1), 128)
    t = min(_round_up(node_tile, 128), _round_up(n, 128))
    npad = _round_up(n, t)

    xf = x.astype(jnp.float32)
    adjf = adj.astype(jnp.float32)
    wf = w.astype(jnp.float32)
    bf = b.reshape(1, nclass).astype(jnp.float32)

    x_p = jnp.pad(xf, ((0, npad - n), (0, 0)))
    adj_p = jnp.pad(adjf, ((0, npad - n), (0, npad - n)))
    w_p = jnp.pad(wf, ((0, 0), (0, cpad - nclass)))
    b_p = jnp.pad(bf, ((0, 0), (0, cpad - nclass)))

    n_row_tiles = npad // t

    # Stage 1: support = x @ W, tiled over node rows.  Full nfeat per block:
    # typical GCN feature dims fit VMEM comfortably alongside a (t, cpad) out.
    support = pl.pallas_call(
        _support_kernel,
        out_shape=jax.ShapeDtypeStruct((npad, cpad), jnp.float32),
        grid_spec=pltpu.PrefetchScalarGridSpec(
            num_scalar_prefetch=0,
            grid=(n_row_tiles,),
            in_specs=[
                pl.BlockSpec((t, nfeat), lambda i: (i, 0)),
                pl.BlockSpec((nfeat, cpad), lambda i: (0, 0)),
            ],
            out_specs=pl.BlockSpec((t, cpad), lambda i: (i, 0)),
        ),
        compiler_params=pltpu.CompilerParams(
            dimension_semantics=("parallel",),
        ),
    )(x_p, w_p)

    # Stage 2: out = relu(adj @ support + support + b), reduction over k tiles.
    out_p = pl.pallas_call(
        _aggregate_kernel,
        out_shape=jax.ShapeDtypeStruct((npad, cpad), jnp.float32),
        grid_spec=pltpu.PrefetchScalarGridSpec(
            num_scalar_prefetch=0,
            grid=(n_row_tiles, n_row_tiles),
            in_specs=[
                pl.BlockSpec((t, t), lambda i, k: (i, k)),        # adj tile
                pl.BlockSpec((t, cpad), lambda i, k: (k, 0)),     # support[k]
                pl.BlockSpec((1, cpad), lambda i, k: (0, 0)),     # bias (resident)
            ],
            out_specs=pl.BlockSpec((t, cpad), lambda i, k: (i, 0)),
            scratch_shapes=[pltpu.VMEM((t, cpad), jnp.float32)],
        ),
        compiler_params=pltpu.CompilerParams(
            dimension_semantics=("parallel", "arbitrary"),
        ),
    )(adj_p, support, b_p)

    return out_p[:n, :nclass]


if __name__ == "__main__":
    # Small-but-tileable shapes: N=300 nodes (pads to 384), nfeat=48,
    # nclass=7 (pads to 128 lanes).  node_tile=128 -> a real (3, 3) grid.
    N, NFEAT, NCLASS = 300, 48, 7
    key = jax.random.PRNGKey(0)
    kx, kadj, kw, kb = jax.random.split(key, 4)

    x = jax.random.normal(kx, (N, NFEAT), dtype=jnp.float32)
    # symmetric non-negative adjacency, zero diagonal
    a_raw = jax.random.uniform(kadj, (N, N), dtype=jnp.float32)
    adj = (a_raw + a_raw.T) * 0.5
    adj = adj * (1.0 - jnp.eye(N, dtype=jnp.float32))

    # GraphConvolution init: uniform(-stdv, stdv), stdv = 1/sqrt(nclass)
    stdv = 1.0 / (NCLASS ** 0.5)
    w = jax.random.uniform(kw, (NFEAT, NCLASS), minval=-stdv, maxval=stdv,
                           dtype=jnp.float32)
    b = jax.random.uniform(kb, (NCLASS,), minval=-stdv, maxval=stdv,
                           dtype=jnp.float32)

    out = gcn_forward(x, adj, w, b, node_tile=128)
    jax.block_until_ready(out)

    # Reference in plain JAX (highest matmul precision to match f32 kernel).
    hp = jax.lax.Precision.HIGHEST
    support_ref = jnp.dot(x, w, precision=hp)
    ref = jnp.maximum(
        jnp.dot(adj + jnp.eye(N, dtype=jnp.float32), support_ref, precision=hp) + b,
        0.0)

    assert out.shape == (N, NCLASS)
    assert jnp.allclose(out, ref, atol=1e-3, rtol=1e-3), \
        float(jnp.max(jnp.abs(out - ref)))

    print("KERNEL_OK")
</pallas_src>

<mosaic_0001>
module attributes {stable_mosaic.version = 11 : i64} {
  func.func @_support_kernel(%arg0: i32, %arg1: memref<128x48xf32, #tpu.memory_space<vmem>>, %arg2: memref<48x128xf32, #tpu.memory_space<vmem>>, %arg3: memref<128x128xf32, #tpu.memory_space<vmem>>) attributes {dimension_semantics = [#tpu.dimension_semantics<parallel>], iteration_bounds = array<i64: 3>, scalar_prefetch = 0 : i64, scratch_operands = 0 : i64, tpu.core_type = #tpu.core_type<tc>, window_params = [{transform_indices = @transform_0, window_bounds = array<i64: 128, 48>}, {pipeline_mode = #tpu.pipeline_mode<synchronous>, transform_indices = @transform_1, window_bounds = array<i64: 48, 128>}, {transform_indices = @transform_2, window_bounds = array<i64: 128, 128>}]} {
    %c0 = arith.constant 0 : index
    %c0_0 = arith.constant 0 : index
    %0 = vector.load %arg1[%c0, %c0_0] : memref<128x48xf32, #tpu.memory_space<vmem>>, vector<128x48xf32>
    %c0_1 = arith.constant 0 : index
    %c0_2 = arith.constant 0 : index
    %1 = vector.load %arg2[%c0_1, %c0_2] : memref<48x128xf32, #tpu.memory_space<vmem>>, vector<48x128xf32>
    %cst = arith.constant dense<0.000000e+00> : vector<128x128xf32>
    %2 = tpu.matmul %0, %1, %cst {dimension_numbers = #tpu.dot_dimension_numbers<[1], [0], [0], [1], [0, 0, 1, 1], [], []>} : vector<128x48xf32>, vector<48x128xf32>, vector<128x128xf32> -> vector<128x128xf32>
    %c0_3 = arith.constant 0 : index
    %c0_4 = arith.constant 0 : index
    %3 = vector.load %arg3[%c0_3, %c0_4] : memref<128x128xf32, #tpu.memory_space<vmem>>, vector<128x128xf32>
    tpu.vector_store %arg3[%c0_3, %c0_4], %2 {strides = array<i32>} : memref<128x128xf32, #tpu.memory_space<vmem>>, vector<128x128xf32>,
    return
  }
  func.func @transform_0(%arg0: i32) -> (i32, i32) {
    %c0_i32 = arith.constant 0 : i32
    %c0_i32_0 = arith.constant 0 : i32
    return %arg0, %c0_i32 : i32, i32
  }
  func.func @transform_1(%arg0: i32) -> (i32, i32) {
    %c0_i32 = arith.constant 0 : i32
    %c0_i32_0 = arith.constant 0 : i32
    %c0_i32_1 = arith.constant 0 : i32
    return %c0_i32, %c0_i32_0 : i32, i32
  }
  func.func @transform_2(%arg0: i32) -> (i32, i32) {
    %c0_i32 = arith.constant 0 : i32
    %c0_i32_0 = arith.constant 0 : i32
    return %arg0, %c0_i32 : i32, i32
  }
}

module attributes {stable_mosaic.version = 11 : i64} {
  func.func @_aggregate_kernel(%arg0: i32, %arg1: i32, %arg2: memref<128x128xf32, #tpu.memory_space<vmem>>, %arg3: memref<128x128xf32, #tpu.memory_space<vmem>>, %arg4: memref<1x128xf32, #tpu.memory_space<vmem>>, %arg5: memref<128x128xf32, #tpu.memory_space<vmem>>, %arg6: memref<128x128xf32, #tpu.memory_space<vmem>>) attributes {dimension_semantics = [#tpu.dimension_semantics<parallel>, #tpu.dimension_semantics<arbitrary>], iteration_bounds = array<i64: 3, 3>, scalar_prefetch = 0 : i64, scratch_operands = 1 : i64, tpu.core_type = #tpu.core_type<tc>, window_params = [{transform_indices = @transform_0, window_bounds = array<i64: 128, 128>}, {transform_indices = @transform_1, window_bounds = array<i64: 128, 128>}, {pipeline_mode = #tpu.pipeline_mode<synchronous>, transform_indices = @transform_2, window_bounds = array<i64: 1, 128>}, {transform_indices = @transform_3, window_bounds = array<i64: 128, 128>}]} {
    %c0_i32 = arith.constant 0 : i32
    %0 = arith.cmpi eq, %arg1, %c0_i32 : i32
    %1 = arith.extui %0 : i1 to i32
    %c0_i32_0 = arith.constant 0 : i32
    %2 = arith.cmpi ne, %1, %c0_i32_0 : i32
    scf.if %2 {
      %cst_10 = arith.constant 0.000000e+00 : f32
      %15 = vector.broadcast %cst_10 : f32 to vector<128x128xf32>
      %c0_11 = arith.constant 0 : index
      %c0_12 = arith.constant 0 : index
      %16 = vector.load %arg6[%c0_11, %c0_12] : memref<128x128xf32, #tpu.memory_space<vmem>>, vector<128x128xf32>
      tpu.vector_store %arg6[%c0_11, %c0_12], %15 {strides = array<i32>} : memref<128x128xf32, #tpu.memory_space<vmem>>, vector<128x128xf32>,
    } else {
    }
    %c0 = arith.constant 0 : index
    %c0_1 = arith.constant 0 : index
    %3 = vector.load %arg6[%c0, %c0_1] : memref<128x128xf32, #tpu.memory_space<vmem>>, vector<128x128xf32>
    %c0_2 = arith.constant 0 : index
    %c0_3 = arith.constant 0 : index
    %4 = vector.load %arg2[%c0_2, %c0_3] : memref<128x128xf32, #tpu.memory_space<vmem>>, vector<128x128xf32>
    %c0_4 = arith.constant 0 : index
    %c0_5 = arith.constant 0 : index
    %5 = vector.load %arg3[%c0_4, %c0_5] : memref<128x128xf32, #tpu.memory_space<vmem>>, vector<128x128xf32>
    %cst = arith.constant dense<0.000000e+00> : vector<128x128xf32>
    %6 = tpu.matmul %4, %5, %cst {dimension_numbers = #tpu.dot_dimension_numbers<[1], [0], [0], [1], [0, 0, 1, 1], [], []>} : vector<128x128xf32>, vector<128x128xf32>, vector<128x128xf32> -> vector<128x128xf32>
    %7 = arith.addf %3, %6 : vector<128x128xf32>
    %c0_6 = arith.constant 0 : index
    %c0_7 = arith.constant 0 : index
    %8 = vector.load %arg6[%c0_6, %c0_7] : memref<128x128xf32, #tpu.memory_space<vmem>>, vector<128x128xf32>
    tpu.vector_store %arg6[%c0_6, %c0_7], %7 {strides = array<i32>} : memref<128x128xf32, #tpu.memory_space<vmem>>, vector<128x128xf32>,
    %9 = arith.cmpi eq, %arg1, %arg0 : i32
    %10 = arith.extui %9 : i1 to i32
    %c0_i32_8 = arith.constant 0 : i32
    %11 = arith.cmpi ne, %10, %c0_i32_8 : i32
    scf.if %11 {
      %c0_10 = arith.constant 0 : index
      %c0_11 = arith.constant 0 : index
      %15 = vector.load %arg6[%c0_10, %c0_11] : memref<128x128xf32, #tpu.memory_space<vmem>>, vector<128x128xf32>
      %c0_12 = arith.constant 0 : index
      %c0_13 = arith.constant 0 : index
      %16 = vector.load %arg3[%c0_12, %c0_13] : memref<128x128xf32, #tpu.memory_space<vmem>>, vector<128x128xf32>
      %17 = arith.addf %15, %16 : vector<128x128xf32>
      %c0_14 = arith.constant 0 : index
      %c0_15 = arith.constant 0 : index
      %18 = vector.load %arg6[%c0_14, %c0_15] : memref<128x128xf32, #tpu.memory_space<vmem>>, vector<128x128xf32>
      tpu.vector_store %arg6[%c0_14, %c0_15], %17 {strides = array<i32>} : memref<128x128xf32, #tpu.memory_space<vmem>>, vector<128x128xf32>,
    } else {
    }
    %c2_i32 = arith.constant 2 : i32
    %12 = arith.cmpi eq, %arg1, %c2_i32 : i32
    %13 = arith.extui %12 : i1 to i32
    %c0_i32_9 = arith.constant 0 : i32
    %14 = arith.cmpi ne, %13, %c0_i32_9 : i32
    scf.if %14 {
      %c0_10 = arith.constant 0 : index
      %c0_11 = arith.constant 0 : index
      %15 = vector.load %arg6[%c0_10, %c0_11] : memref<128x128xf32, #tpu.memory_space<vmem>>, vector<128x128xf32>
      %c0_12 = arith.constant 0 : index
      %c0_13 = arith.constant 0 : index
      %16 = vector.load %arg4[%c0_12, %c0_13] : memref<1x128xf32, #tpu.memory_space<vmem>>, vector<1x128xf32>
      %17 = vector.broadcast %16 : vector<1x128xf32> to vector<128x128xf32>
      %18 = arith.addf %15, %17 : vector<128x128xf32>
      %cst_14 = arith.constant 0.000000e+00 : f32
      %19 = vector.broadcast %cst_14 : f32 to vector<128x128xf32>
      %20 = arith.maximumf %18, %19 : vector<128x128xf32>
      %c0_15 = arith.constant 0 : index
      %c0_16 = arith.constant 0 : index
      %21 = vector.load %arg5[%c0_15, %c0_16] : memref<128x128xf32, #tpu.memory_space<vmem>>, vector<128x128xf32>
      tpu.vector_store %arg5[%c0_15, %c0_16], %20 {strides = array<i32>} : memref<128x128xf32, #tpu.memory_space<vmem>>, vector<128x128xf32>,
    } else {
    }
    return
  }
  func.func @transform_0(%arg0: i32, %arg1: i32) -> (i32, i32) {
    %c0_i32 = arith.constant 0 : i32
    return %arg0, %arg1 : i32, i32
  }
  func.func @transform_1(%arg0: i32, %arg1: i32) -> (i32, i32) {
    %c0_i32 = arith.constant 0 : i32
    %c0_i32_0 = arith.constant 0 : i32
    return %arg1, %c0_i32 : i32, i32
  }
  func.func @transform_2(%arg0: i32, %arg1: i32) -> (i32, i32) {
    %c0_i32 = arith.constant 0 : i32
    %c0_i32_0 = arith.constant 0 : i32
    %c0_i32_1 = arith.constant 0 : i32
    return %c0_i32, %c0_i32_0 : i32, i32
  }
  func.func @transform_3(%arg0: i32, %arg1: i32) -> (i32, i32) {
    %c0_i32 = arith.constant 0 : i32
    %c0_i32_0 = arith.constant 0 : i32
    return %arg0, %c0_i32 : i32, i32
  }
}

</mosaic_0001>

<bundles_post_ra>
// kernel: gcn_forward.2
= control target key start
LH: loop header
LB: loop body
LE: loop exit
PB: predicated region body
PF: predicated region fallthrough
CT: control target
= control target key end

     0   :  { %s569_s9 = smov 0   ;;  %s663_s0 = inlined_call_operand.vmem [shape: f32[384,48], index: 0, kind: input, shape index: {}]   ;;  %s664_s1 = inlined_call_operand.vmem [shape: f32[48,128], index: 1, kind: input, shape index: {}]   ;;  %s665_s2 = inlined_call_operand.vmem [shape: f32[384,128], index: 2, kind: output, shape index: {}]  }
   0x1 LB: > { %s435_s10 = sadd.s32 4294967295, %s552_s9   ;;  %p439_p0 = scmp.ge.s32.totalorder %s552_s9, 1  ;;  %s552_s9 = sphi %s569_s9, %s12_s9  }
   0x2   : > { %p113_p1 = scmp.lt.s32.totalorder %s552_s9, 4 }
   0x4   : > { %p114_p2 = pnand %p439_p0, %p113_p1 }
   0x5   : > { %v163_v0 = vld [vmem:[%s664_s1] sm:$0xff] (!%p114_p2)  ;;  %v164_v1 = vld [vmem:[%s664_s1 + $0x8] sm:$0xff] (!%p114_p2)  ;;  %v165_v2 = vld [vmem:[%s664_s1 + $0x10] sm:$0xff] (!%p114_p2)  ;;  %s440_s17 = sshll.u32 (!%p114_p2), %s435_s10, 4  ;;  %vm169_vm0 = vcmask (!%p114_p2), 392192  }
   0x6   : > { %117 = sbr.rel (%p114_p2) target bundleno = 247 (0xf7), region = 28  ;;  %v520_v3 = vpack.c.bf16 (!%p114_p2), %v164_v1, %v163_v0  ;;  %v166_v4 = vld [vmem:[%s664_s1 + $0x18] sm:$0xff] (!%p114_p2)  ;;  %p136_p3 = scmp.lt.s32.totalorder (!%p114_p2), %s440_s17, 47  ;;  %v167_v6 = vld [vmem:[%s664_s1 + $0x20] sm:$0xff] (!%p114_p2)  ;;  %v168_v7 = vld [vmem:[%s664_s1 + $0x28] sm:$0xff] (!%p114_p2) }
   0x7   : > { %v524_v5 = vpack.c.bf16 (!%p114_p2), %v166_v4, %v165_v2  ;;  %v528_v8 = vpack.c.bf16 (!%p114_p2), %v168_v7, %v167_v6 }
   0x8   : > { %521 = vmatprep.subr.bf16.mxu0 (!%p114_p2), %v520_v3  ;;  %532 = vmatprep.subr.bf16.mxu1 (!%p114_p2), %v520_v3 }
   0x9   : > { %523 = vmatpush3.bf16.msra.mxu0 (!%p114_p2), %v520_v3  ;;  %535 = vmatpush3.bf16.msra.mxu1 (!%p114_p2), %v520_v3 }
   0xa   : > { %525 = vmatprep.subr.bf16.mxu0 (!%p114_p2), %v524_v5  ;;  %533 = vmatprep.subr.bf16.mxu1 (!%p114_p2), %v524_v5 }
   0xd   : > { %s667_s17 = smov (!%p136_p3, %s440_s17), 47  ;;  %527 = vmatpush3.bf16.msra.mxu0 %v524_v5  ;;  %536 = vmatpush3.bf16.msra.mxu1 %v524_v5 }
   0xe   : > { %s441_s24 = sshll.u32 %s667_s17, 3  ;;  %529 = vmatprep.subr.bf16.mxu0 %v528_v8  ;;  %534 = vmatprep.subr.bf16.mxu1 %v528_v8 }
   0xf   : > { %s603_s27 = scalar_lea.vmem %s663_s0, %s441_s24  ;;  %s642_s30 = scalar_lea.vmem %s665_s2, %s441_s24 }
  0x10   : > { %v147_v9 = vld [vmem:[%s603_s27] sm:$0xff]  ;;  %v148_v11 = vld [vmem:[%s603_s27 + $0x8] sm:$0xff]  ;;  %v149_v13 = vld [vmem:[%s603_s27 + $0x10] sm:$0xff] }
  0x11   : > { %v155_v10 = vld [vmem:[%s603_s27 + $0x40] sm:$0xff]  ;;  %496 = vmatprep.mubr.msk.f32.mxu0 %vm169_vm0, %v147_v9  ;;  %531 = vmatpush3.bf16.msra.mxu0 %v528_v8  ;;  %v156_v12 = vld [vmem:[%s603_s27 + $0x48] sm:$0xff]  ;;  %v157_v14 = vld [vmem:[%s603_s27 + $0x50] sm:$0xff] }
  0x12   : > { %508 = vmatprep.mubr.msk.f32.mxu1 %vm169_vm0, %v155_v10  ;;  %537 = vmatpush3.bf16.msra.mxu1 %v528_v8  ;;  %v150_v15 = vld [vmem:[%s603_s27 + $0x18] sm:$0xff]  ;;  %v151_v17 = vld [vmem:[%s603_s27 + $0x20] sm:$0xff]  ;;  %v152_v19 = vld [vmem:[%s603_s27 + $0x28] sm:$0xff] }
  0x13   : > { %v158_v16 = vld [vmem:[%s603_s27 + $0x58] sm:$0xff]  ;;  %v159_v18 = vld [vmem:[%s603_s27 + $0x60] sm:$0xff]  ;;  %v160_v20 = vld [vmem:[%s603_s27 + $0x68] sm:$0xff] }
  0x14   : > { %497 = vmatmul.mubr.msk.f32.vlgmr.msra.gmra.mrb[0].mxu0 %vm169_vm0, %v148_v11  ;;  %v153_v21 = vld [vmem:[%s603_s27 + $0x30] sm:$0xff]  ;;  %v154_v23 = vld [vmem:[%s603_s27 + $0x38] sm:$0xff] }
  0x15   : > { %509 = vmatmul.mubr.msk.f32.vlgmr.msra.gmra.mrb[0].mxu1 %vm169_vm0, %v156_v12  ;;  %499 = vmatprep.mubr.msk.f32.mxu0 %vm169_vm0, %v149_v13  ;;  %v161_v22 = vld [vmem:[%s603_s27 + $0x70] sm:$0xff]  ;;  %v162_v24 = vld [vmem:[%s603_s27 + $0x78] sm:$0xff] }
  0x16   : > { %511 = vmatprep.mubr.msk.f32.mxu1 %vm169_vm0, %v157_v14 }
  0x18   : > { %500 = vmatmul.mubr.msk.f32.gmra.mrb[2].mxu0 %vm169_vm0, %v150_v15 }
  0x19   : > { %512 = vmatmul.mubr.msk.f32.gmra.mrb[2].mxu1 %vm169_vm0, %v158_v16  ;;  %502 = vmatprep.mubr.msk.f32.mxu0 %vm169_vm0, %v151_v17 }
  0x1a   : > { %514 = vmatprep.mubr.msk.f32.mxu1 %vm169_vm0, %v159_v18 }
  0x1c   : > { %503 = vmatmul.mubr.msk.f32.gmra.mrb[4].mxu0 %vm169_vm0, %v152_v19 }
  0x1d   : > { %515 = vmatmul.mubr.msk.f32.gmra.mrb[4].mxu1 %vm169_vm0, %v160_v20  ;;  %505 = vmatprep.mubr.msk.f32.mxu0 %vm169_vm0, %v153_v21 }
  0x1e   : > { %517 = vmatprep.mubr.msk.f32.mxu1 %vm169_vm0, %v161_v22 }
  0x20   : > { %506 = vmatmul.mubr.msk.f32.gmra.mrb[6].mxu0 %vm169_vm0, %v154_v23 }
  0x21   : > { %518 = vmatmul.mubr.msk.f32.gmra.mrb[6].mxu1 %vm169_vm0, %v162_v24 }
  0xe7   : > { %v498_v25 = vpop.f32.mrb[0].mxu0 }
  0xe8   : > { %v510_v26 = vpop.f32.mrb[0].mxu1  ;;  %364 = vst [vmem:[%s642_s30 + $0x8] sm:$0xff] %v498_v25  ;;  %v284_v27 = vpop.f32.mrb[1].mxu0 }
  0xe9   : > { %372 = vst [vmem:[%s642_s30 + $0x48] sm:$0xff] %v510_v26  ;;  %v324_v28 = vpop.f32.mrb[1].mxu1  ;;  %363 = vst [vmem:[%s642_s30] sm:$0xff] %v284_v27 }
  0xea   : > { %371 = vst [vmem:[%s642_s30 + $0x40] sm:$0xff] %v324_v28 }
  0xeb   : > { %v501_v29 = vpop.f32.mrb[2].mxu0 }
  0xec   : > { %v513_v30 = vpop.f32.mrb[2].mxu1  ;;  %366 = vst [vmem:[%s642_s30 + $0x18] sm:$0xff] %v501_v29  ;;  %v294_v31 = vpop.f32.mrb[3].mxu0 }
  0xed   : > { %374 = vst [vmem:[%s642_s30 + $0x58] sm:$0xff] %v513_v30  ;;  %v334_v32 = vpop.f32.mrb[3].mxu1  ;;  %365 = vst [vmem:[%s642_s30 + $0x10] sm:$0xff] %v294_v31 }
  0xee   : > { %373 = vst [vmem:[%s642_s30 + $0x50] sm:$0xff] %v334_v32 }
  0xef   : > { %v504_v33 = vpop.f32.mrb[4].mxu0 }
  0xf0   : > { %v516_v34 = vpop.f32.mrb[4].mxu1  ;;  %368 = vst [vmem:[%s642_s30 + $0x28] sm:$0xff] %v504_v33  ;;  %v304_v35 = vpop.f32.mrb[5].mxu0 }
  0xf1   : > { %376 = vst [vmem:[%s642_s30 + $0x68] sm:$0xff] %v516_v34  ;;  %v344_v36 = vpop.f32.mrb[5].mxu1  ;;  %367 = vst [vmem:[%s642_s30 + $0x20] sm:$0xff] %v304_v35 }
  0xf2   : > { %375 = vst [vmem:[%s642_s30 + $0x60] sm:$0xff] %v344_v36 }
  0xf3   : > { %v507_v37 = vpop.f32.mrb[6].mxu0 }
  0xf4   : > { %v519_v38 = vpop.f32.mrb[6].mxu1  ;;  %370 = vst [vmem:[%s642_s30 + $0x38] sm:$0xff] %v507_v37  ;;  %v314_v39 = vpop.f32.mrb[7].mxu0 }
  0xf5   : > { %378 = vst [vmem:[%s642_s30 + $0x78] sm:$0xff] %v519_v38  ;;  %v354_v40 = vpop.f32.mrb[7].mxu1  ;;  %369 = vst [vmem:[%s642_s30 + $0x30] sm:$0xff] %v314_v39 }
  0xf6   : > { %377 = vst [vmem:[%s642_s30 + $0x70] sm:$0xff] %v354_v40 }
  0xf7 PF: > { %s12_s9 = sadd.s32 1, %s552_s9  }
  0xf8   : > { %p9_p4 = scmp.ge.s32.totalorder %s12_s9, 5  }
  0xfa   :  { %11 = sbr.rel (!%p9_p4) target bundleno = 1 (0x1), region = 58 }

// kernel: gcn_forward.3
= control target key start
LH: loop header
LB: loop body
LE: loop exit
PB: predicated region body
PF: predicated region fallthrough
CT: control target
= control target key end

     0   :  { %s1073_s12 = smov 0   ;;  %s1075_s13 = smov 0   ;;  %s1260_s0 = inlined_call_operand.vmem [shape: f32[384,384], index: 0, kind: input, shape index: {}]   ;;  %s1261_s1 = inlined_call_operand.vmem [shape: f32[384,128], index: 1, kind: input, shape index: {}]   ;;  %s1262_s2 = inlined_call_operand.vmem [shape: f32[1,128], index: 2, kind: input, shape index: {}]   ;;  %s1263_s3 = inlined_call_operand.vmem [shape: f32[384,128], index: 3, kind: output, shape index: {}]  }
   0x1   :  { %s1077_s14 = smov 0   ;;  %s1079_s15 = smov 0  }
   0x2   :  { %s1081_s16 = smov 0   ;;  %s1083_s17 = smov 0  }
   0x3   :  { %s1085_s18 = smov 0  }
   0x4 LB: > { %s22_s19 = sadd.s32 1, %s1042_s16  ;;  %s25_s20 = sadd.s32 1, %s1046_s17  ;;  %s1050_s18 = sphi %s1085_s18, %s13_s18   ;;  %s1046_s17 = sphi %s1083_s17, %s1269_s17   ;;  %s1042_s16 = sphi %s1081_s16, %s1268_s16   ;;  %s1038_s15 = sphi %s1079_s15, %s1267_s15   ;;  %s1034_s14 = sphi %s1077_s14, %s1266_s14   ;;  %s1030_s13 = sphi %s1075_s13, %s1265_s13   ;;  %s1026_s12 = sphi %s1073_s12, %s1264_s12  }
   0x5   : > { %p23_p0 = scmp.ge.s32.totalorder %s22_s19, 3  ;;  %p41_p1 = scmp.ne.s32.totalorder %s1030_s13, %s1026_s12 }
   0x6   : > { %p42_p2 = scmp.eq.s32.totalorder %s1050_s18, 0  ;;  %s34_s24 = sadd.s32 1, %s1030_s13 }
   0x7   : > { %s1271_s19 = smov (%p23_p0, %s22_s19), 0  ;;  %s1273_s20 = smov (!%p23_p0, %s25_s20), %s1046_s17 }
   0x8   : > { %p43_p3 = por %p42_p2, %p41_p1  ;;  %p27_p4 = scmp.ge.s32.totalorder %s1273_s20, 3 }
   0x9   : > { %s30_s21 = ssub.s32 %s1042_s16, %s1271_s19  ;;  %p785_p6 = scmp.ge.s32.totalorder %s1050_s18, 9 }
   0xa   : > { %s1275_s20 = smov (%p27_p4, %s1273_s20), 0 }
   0xb   : > { %s29_s22 = ssub.s32 %s1046_s17, %s1275_s20  ;;  %143 = sbr.rel (%p785_p6) target bundleno = 33 (0x21), region = 20 }
   0xc   : > { %s31_s23 = sor.u32 %s30_s21, %s29_s22 }
   0xd   : > { %p32_p5 = scmp.eq.s32.totalorder %s31_s23, 0 }
   0xf   : > { %s1124_s25 = scalar_select %p32_p5, %s1030_s13, %s34_s24  }
  0x12   : > { %146 = sbr.rel (!%p43_p3) target bundleno = 33 (0x21), region = 24  ;;  %s148_s26 = sand.u32 (%p43_p3), 1, %s1030_s13  }
  0x13   : > { %s938_s27 = smul.u32 (%p43_p3), 48, %s1046_s17  ;;  %s786_s28 = sshll.u32 (%p43_p3), %s148_s26, 7 }
  0x14   : > { %s150_s7 = scalar_lea.vmem (%p43_p3), [#allocation3], %s786_s28 }
  0x15   : > { %s153_s29 = sadd.s32 (%p43_p3), %s1042_s16, %s938_s27 }
  0x16   : > { %s789_s30 = sshll.u32 (%p43_p3), %s153_s29, 3 }
  0x17   : > { %s1133_s6 = scalar_lea.vmem (%p43_p3), %s1260_s0, %s789_s30 }
  0x18   : > { %v213_v0 = vld [vmem:[%s1133_s6] sm:$0xff] (%p43_p3)  ;;  %v215_v1 = vld [vmem:[%s1133_s6 + $0x18] sm:$0xff] (%p43_p3)  ;;  %v217_v2 = vld [vmem:[%s1133_s6 + $0x30] sm:$0xff] (%p43_p3) }
  0x19   : > { %214 = vst [vmem:[%s150_s7] sm:$0xff] %v213_v0  ;;  %216 = vst [vmem:[%s150_s7 + $0x8] sm:$0xff] %v215_v1  ;;  %v219_v3 = vld [vmem:[%s1133_s6 + $0x48] sm:$0xff]  ;;  %v221_v4 = vld [vmem:[%s1133_s6 + $0x60] sm:$0xff] }
  0x1a   : > { %218 = vst [vmem:[%s150_s7 + $0x10] sm:$0xff] %v217_v2  ;;  %v223_v5 = vld [vmem:[%s1133_s6 + $0x78] sm:$0xff]  ;;  %220 = vst [vmem:[%s150_s7 + $0x18] sm:$0xff] %v219_v3  ;;  %v225_v6 = vld [vmem:[%s1133_s6 + $0x90] sm:$0xff] }
  0x1b   : > { %222 = vst [vmem:[%s150_s7 + $0x20] sm:$0xff] %v221_v4  ;;  %224 = vst [vmem:[%s150_s7 + $0x28] sm:$0xff] %v223_v5  ;;  %v227_v7 = vld [vmem:[%s1133_s6 + $0xa8] sm:$0xff]  ;;  %v229_v8 = vld [vmem:[%s1133_s6 + $0xc0] sm:$0xff] }
  0x1c   : > { %226 = vst [vmem:[%s150_s7 + $0x30] sm:$0xff] %v225_v6  ;;  %228 = vst [vmem:[%s150_s7 + $0x38] sm:$0xff] %v227_v7  ;;  %v231_v9 = vld [vmem:[%s1133_s6 + $0xd8] sm:$0xff]  ;;  %v233_v10 = vld [vmem:[%s1133_s6 + $0xf0] sm:$0xff] }
  0x1d   : > { %230 = vst [vmem:[%s150_s7 + $0x40] sm:$0xff] %v229_v8  ;;  %v235_v11 = vld [vmem:[%s1133_s6 + $0x108] sm:$0xff]  ;;  %232 = vst [vmem:[%s150_s7 + $0x48] sm:$0xff] %v231_v9  ;;  %v237_v12 = vld [vmem:[%s1133_s6 + $0x120] sm:$0xff] }
  0x1e   : > { %234 = vst [vmem:[%s150_s7 + $0x50] sm:$0xff] %v233_v10  ;;  %236 = vst [vmem:[%s150_s7 + $0x58] sm:$0xff] %v235_v11  ;;  %v239_v13 = vld [vmem:[%s1133_s6 + $0x138] sm:$0xff]  ;;  %v241_v14 = vld [vmem:[%s1133_s6 + $0x150] sm:$0xff] }
  0x1f   : > { %238 = vst [vmem:[%s150_s7 + $0x60] sm:$0xff] %v237_v12  ;;  %240 = vst [vmem:[%s150_s7 + $0x68] sm:$0xff] %v239_v13  ;;  %v243_v15 = vld [vmem:[%s1133_s6 + $0x168] sm:$0xff] }
  0x20   : > { %242 = vst [vmem:[%s150_s7 + $0x70] sm:$0xff] %v241_v14  ;;  %244 = vst [vmem:[%s150_s7 + $0x78] sm:$0xff] %v243_v15 }
  0x21 PF: > { %p790_p7 = scmp.ge.s32.totalorder %s1050_s18, 1  ;;  %p258_p8 = scmp.lt.s32.totalorder %s1050_s18, 10 }
  0x23   : > { %p259_p9 = pnand %p790_p7, %p258_p8 }
  0x24   : > { %s265_s8 = sand.u32 (!%p259_p9), 1, %s1026_s12   ;;  %s792_s9 = sshll.u32 (!%p259_p9), %s1034_s14, 4 }
  0x25   : > { %262 = sbr.rel (%p259_p9) target bundleno = 343 (0x157), region = 66  ;;  %s791_s10 = sshll.u32 (!%p259_p9), %s265_s8, 7 }
  0x26   : > { %p295_p10 = scmp.lt.s32.totalorder (!%p259_p9), %s792_s9, 47  ;;  %s794_s11 = sshll.u32 (!%p259_p9), %s1038_s15, 4 }
  0x27   : > { %p301_p11 = scmp.lt.s32.totalorder (!%p259_p9), %s794_s11, 47  ;;  %s1166_s12 = scalar_lea.vmem (!%p259_p9), [#allocation3], %s791_s10 }
  0x28   : > { %p796_p12 = scmp.ne.s32.totalorder (!%p259_p9), %s1034_s14, 0 }
  0x2c   : > { %s1277_s9 = smov (!%p295_p10, %s792_s9), 47  ;;  %s1279_s11 = smov (!%p301_p11, %s794_s11), 47 }
  0x2d   : > { %s793_s21 = sshll.u32 %s1277_s9, 3  ;;  %s795_s26 = sshll.u32 %s1279_s11, 3  ;;  %v1052_v16 = vmov (!%p796_p12), 0.0  }
  0x2e   : > { %s1159_s24 = scalar_lea.vmem %s1261_s1, %s793_s21  ;;  %s1164_s29 = scalar_lea.vmem %s1263_s3, %s795_s26  ;;  %310 = vst [vmem:[#allocation2] sm:$0xff] (!%p796_p12), %v1052_v16  ;;  %311 = vst [vmem:[#allocation2 + $0x8] sm:$0xff] (!%p796_p12), %v1052_v16 }
  0x2f   : > { %309 = sbr.rel (%p796_p12) target bundleno = 54 (0x36), region = 74  ;;  %312 = vst [vmem:[#allocation2 + $0x10] sm:$0xff] (!%p796_p12), %v1052_v16  ;;  %313 = vst [vmem:[#allocation2 + $0x18] sm:$0xff] (!%p796_p12), %v1052_v16 }
  0x30   : > { %314 = vst [vmem:[#allocation2 + $0x20] sm:$0xff] (!%p796_p12), %v1052_v16  ;;  %315 = vst [vmem:[#allocation2 + $0x28] sm:$0xff] (!%p796_p12), %v1052_v16 }
  0x31   : > { %316 = vst [vmem:[#allocation2 + $0x30] sm:$0xff] (!%p796_p12), %v1052_v16  ;;  %317 = vst [vmem:[#allocation2 + $0x38] sm:$0xff] (!%p796_p12), %v1052_v16 }
  0x32   : > { %318 = vst [vmem:[#allocation2 + $0x40] sm:$0xff] (!%p796_p12), %v1052_v16  ;;  %319 = vst [vmem:[#allocation2 + $0x48] sm:$0xff] (!%p796_p12), %v1052_v16 }
  0x33   : > { %320 = vst [vmem:[#allocation2 + $0x50] sm:$0xff] (!%p796_p12), %v1052_v16  ;;  %321 = vst [vmem:[#allocation2 + $0x58] sm:$0xff] (!%p796_p12), %v1052_v16 }
  0x34   : > { %322 = vst [vmem:[#allocation2 + $0x60] sm:$0xff] (!%p796_p12), %v1052_v16  ;;  %323 = vst [vmem:[#allocation2 + $0x68] sm:$0xff] (!%p796_p12), %v1052_v16 }
  0x35   : > { %324 = vst [vmem:[#allocation2 + $0x70] sm:$0xff] (!%p796_p12), %v1052_v16  ;;  %325 = vst [vmem:[#allocation2 + $0x78] sm:$0xff] (!%p796_p12), %v1052_v16 }
  0x36 PF: > { %v358_v17 = vld [vmem:[%s1159_s24] sm:$0xff]  ;;  %v359_v18 = vld [vmem:[%s1159_s24 + $0x8] sm:$0xff]  ;;  %v360_v19 = vld [vmem:[%s1159_s24 + $0x10] sm:$0xff]  ;;  %p797_p13 = scmp.ne.s32.totalorder %s1034_s14, %s1038_s15 }
  0x37   : > { %v890_v20 = vpack.c.bf16 %v359_v18, %v358_v17  ;;  %v361_v21 = vld [vmem:[%s1159_s24 + $0x18] sm:$0xff]  ;;  %v362_v23 = vld [vmem:[%s1159_s24 + $0x20] sm:$0xff]  ;;  %v363_v24 = vld [vmem:[%s1159_s24 + $0x28] sm:$0xff] }
  0x38   : > { %v894_v22 = vpack.c.bf16 %v361_v21, %v360_v19  ;;  %v898_v25 = vpack.c.bf16 %v363_v24, %v362_v23  ;;  %v342_v26 = vld [vmem:[%s1166_s12] sm:$0xff]  ;;  %v364_v28 = vld [vmem:[%s1159_s24 + $0x30] sm:$0xff]  ;;  %v365_v29 = vld [vmem:[%s1159_s24 + $0x38] sm:$0xff] }
  0x39   : > { %891 = vmatprep.subr.bf16.mxu0 %v890_v20  ;;  %922 = vmatprep.subr.bf16.mxu1 %v890_v20  ;;  %v350_v27 = vld [vmem:[%s1166_s12 + $0x40] sm:$0xff]  ;;  %v902_v30 = vpack.c.bf16 %v365_v29, %v364_v28  ;;  %v367_v32 = vld [vmem:[%s1159_s24 + $0x48] sm:$0xff]  ;;  %v368_v34 = vld [vmem:[%s1159_s24 + $0x50] sm:$0xff] }
  0x3a   : > { %893 = vmatpush3.bf16.msra.mxu0 %v890_v20  ;;  %930 = vmatpush3.bf16.msra.mxu1 %v890_v20  ;;  %v366_v31 = vld [vmem:[%s1159_s24 + $0x40] sm:$0xff]  ;;  %v369_v35 = vld [vmem:[%s1159_s24 + $0x58] sm:$0xff]  ;;  %v371_v38 = vld [vmem:[%s1159_s24 + $0x68] sm:$0xff] }
  0x3b   : > { %895 = vmatprep.subr.bf16.mxu0 %v894_v22  ;;  %923 = vmatprep.subr.bf16.mxu1 %v894_v22  ;;  %v906_v33 = vpack.c.bf16 %v367_v32, %v366_v31  ;;  %v910_v36 = vpack.c.bf16 %v369_v35, %v368_v34  ;;  %v370_v37 = vld [vmem:[%s1159_s24 + $0x60] sm:$0xff]  ;;  %v372_v40 = vld [vmem:[%s1159_s24 + $0x70] sm:$0xff]  ;;  %v373_v41 = vld [vmem:[%s1159_s24 + $0x78] sm:$0xff] }
  0x3c   : > { %866 = vmatprep.mubr.f32.mxu0 %v342_v26  ;;  %878 = vmatprep.mubr.f32.mxu1 %v350_v27  ;;  %v914_v39 = vpack.c.bf16 %v371_v38, %v370_v37  ;;  %v918_v42 = vpack.c.bf16 %v373_v41, %v372_v40  ;;  %v343_v43 = vld [vmem:[%s1166_s12 + $0x8] sm:$0xff]  ;;  %v344_v45 = vld [vmem:[%s1166_s12 + $0x10] sm:$0xff]  ;;  %v345_v47 = vld [vmem:[%s1166_s12 + $0x18] sm:$0xff] }
  0x3d   : > { %v351_v44 = vld [vmem:[%s1166_s12 + $0x48] sm:$0xff]  ;;  %v352_v46 = vld [vmem:[%s1166_s12 + $0x50] sm:$0xff]  ;;  %v353_v48 = vld [vmem:[%s1166_s12 + $0x58] sm:$0xff] }
  0x3e   : > { %897 = vmatpush3.bf16.msra.mxu0 %v894_v22  ;;  %931 = vmatpush3.bf16.msra.mxu1 %v894_v22  ;;  %v346_v49 = vld [vmem:[%s1166_s12 + $0x20] sm:$0xff]  ;;  %v347_v51 = vld [vmem:[%s1166_s12 + $0x28] sm:$0xff]  ;;  %v348_v53 = vld [vmem:[%s1166_s12 + $0x30] sm:$0xff] }
  0x3f   : > { %899 = vmatprep.subr.bf16.mxu0 %v898_v25  ;;  %924 = vmatprep.subr.bf16.mxu1 %v898_v25  ;;  %v354_v50 = vld [vmem:[%s1166_s12 + $0x60] sm:$0xff]  ;;  %v355_v52 = vld [vmem:[%s1166_s12 + $0x68] sm:$0xff]  ;;  %v356_v54 = vld [vmem:[%s1166_s12 + $0x70] sm:$0xff] }
  0x40   : > { %v349_v55 = vld [vmem:[%s1166_s12 + $0x38] sm:$0xff]  ;;  %v327_v57 = vld [vmem:[#allocation2 + $0x8] sm:$0xff]  ;;  %v326_v59 = vld [vmem:[#allocation2] sm:$0xff] }
  0x41   : > { %v357_v56 = vld [vmem:[%s1166_s12 + $0x78] sm:$0xff]  ;;  %v335_v58 = vld [vmem:[#allocation2 + $0x48] sm:$0xff]  ;;  %v334_v60 = vld [vmem:[#allocation2 + $0x40] sm:$0xff] }
  0x42   : > { %901 = vmatpush3.bf16.msra.mxu0 %v898_v25  ;;  %932 = vmatpush3.bf16.msra.mxu1 %v898_v25  ;;  %v329_v5 = vld [vmem:[#allocation2 + $0x18] sm:$0xff]  ;;  %v328_v7 = vld [vmem:[#allocation2 + $0x10] sm:$0xff]  ;;  %v331_v17 = vld [vmem:[#allocation2 + $0x28] sm:$0xff] }
  0x43   : > { %903 = vmatprep.subr.bf16.mxu0 %v902_v30  ;;  %925 = vmatprep.subr.bf16.mxu1 %v902_v30  ;;  %v337_v6 = vld [vmem:[#allocation2 + $0x58] sm:$0xff]  ;;  %v336_v8 = vld [vmem:[#allocation2 + $0x50] sm:$0xff]  ;;  %v339_v18 = vld [vmem:[#allocation2 + $0x68] sm:$0xff] }
  0x44   : > { %v330_v19 = vld [vmem:[#allocation2 + $0x20] sm:$0xff]  ;;  %v333_v29 = vld [vmem:[#allocation2 + $0x38] sm:$0xff]  ;;  %v332_v31 = vld [vmem:[#allocation2 + $0x30] sm:$0xff] }
  0x45   : > { %v338_v20 = vld [vmem:[#allocation2 + $0x60] sm:$0xff]  ;;  %v340_v32 = vld [vmem:[#allocation2 + $0x70] sm:$0xff] }
  0x46   : > { %905 = vmatpush3.bf16.msra.mxu0 %v902_v30  ;;  %933 = vmatpush3.bf16.msra.mxu1 %v902_v30  ;;  %v341_v30 = vld [vmem:[#allocation2 + $0x78] sm:$0xff] }
  0x47   : > { %907 = vmatprep.subr.bf16.mxu0 %v906_v33  ;;  %926 = vmatprep.subr.bf16.mxu1 %v906_v33 }
  0x4a   : > { %909 = vmatpush3.bf16.msra.mxu0 %v906_v33  ;;  %934 = vmatpush3.bf16.msra.mxu1 %v906_v33 }
  0x4b   : > { %911 = vmatprep.subr.bf16.mxu0 %v910_v36  ;;  %927 = vmatprep.subr.bf16.mxu1 %v910_v36 }
  0x4e   : > { %913 = vmatpush3.bf16.msra.mxu0 %v910_v36  ;;  %935 = vmatpush3.bf16.msra.mxu1 %v910_v36 }
  0x4f   : > { %915 = vmatprep.subr.bf16.mxu0 %v914_v39  ;;  %928 = vmatprep.subr.bf16.mxu1 %v914_v39 }
  0x52   : > { %917 = vmatpush3.bf16.msra.mxu0 %v914_v39  ;;  %936 = vmatpush3.bf16.msra.mxu1 %v914_v39 }
  0x53   : > { %919 = vmatprep.subr.bf16.mxu0 %v918_v42  ;;  %929 = vmatprep.subr.bf16.mxu1 %v918_v42 }
  0x56   : > { %921 = vmatpush3.bf16.msra.mxu0 %v918_v42  ;;  %937 = vmatpush3.bf16.msra.mxu1 %v918_v42  ;;  %v571_v42 = vld [vmem:[%s1159_s24] sm:$0xff] (!%p797_p13) }
  0x59   : > { %867 = vmatmul.mubr.f32.vlgmr.msra.gmra.mrb[0].mxu0 %v343_v43  ;;  %879 = vmatmul.mubr.f32.vlgmr.msra.gmra.mrb[0].mxu1 %v351_v44 }
  0x5a   : > { %869 = vmatprep.mubr.f32.mxu0 %v344_v45  ;;  %881 = vmatprep.mubr.f32.mxu1 %v352_v46  ;;  %v572_v45 = vld [vmem:[%s1159_s24 + $0x8] sm:$0xff] (!%p797_p13) }
  0x5d   : > { %870 = vmatmul.mubr.f32.gmra.mrb[2].mxu0 %v345_v47  ;;  %882 = vmatmul.mubr.f32.gmra.mrb[2].mxu1 %v353_v48  ;;  %v573_v47 = vld [vmem:[%s1159_s24 + $0x10] sm:$0xff] (!%p797_p13) }
  0x5e   : > { %872 = vmatprep.mubr.f32.mxu0 %v346_v49  ;;  %884 = vmatprep.mubr.f32.mxu1 %v354_v50 }
  0x61   : > { %873 = vmatmul.mubr.f32.gmra.mrb[4].mxu0 %v347_v51  ;;  %885 = vmatmul.mubr.f32.gmra.mrb[4].mxu1 %v355_v52  ;;  %v574_v51 = vld [vmem:[%s1159_s24 + $0x18] sm:$0xff] (!%p797_p13) }
  0x62   : > { %875 = vmatprep.mubr.f32.mxu0 %v348_v53  ;;  %887 = vmatprep.mubr.f32.mxu1 %v356_v54  ;;  %v575_v54 = vld [vmem:[%s1159_s24 + $0x20] sm:$0xff] (!%p797_p13) }
  0x65   : > { %876 = vmatmul.mubr.f32.gmra.mrb[6].mxu0 %v349_v55  ;;  %888 = vmatmul.mubr.f32.gmra.mrb[6].mxu1 %v357_v56  ;;  %v576_v56 = vld [vmem:[%s1159_s24 + $0x28] sm:$0xff] (!%p797_p13) }
 0x12c   : > { %v868_v61 = vpop.f32.mrb[0].mxu0  ;;  %v880_v62 = vpop.f32.mrb[0].mxu1 }
 0x12d   : > { %v520_v63 = vadd.f32 %v868_v61, %v327_v57  ;;  %v528_v0 = vadd.f32 %v880_v62, %v335_v58  ;;  %v440_v1 = vpop.f32.mrb[1].mxu0  ;;  %v480_v2 = vpop.f32.mrb[1].mxu1 }
 0x12e   : > { %v519_v3 = vadd.f32 %v440_v1, %v326_v59  ;;  %v527_v4 = vadd.f32 %v480_v2, %v334_v60  ;;  %v577_v60 = vld [vmem:[%s1159_s24 + $0x30] sm:$0xff] (!%p797_p13)  ;;  %v579_v1 = vld [vmem:[%s1159_s24 + $0x40] sm:$0xff] (!%p797_p13) }
 0x12f   : > { %536 = vst [vmem:[#allocation2 + $0x8] sm:$0xff] %v520_v63  ;;  %544 = vst [vmem:[#allocation2 + $0x48] sm:$0xff] %v528_v0  ;;  %v578_v63 = vld [vmem:[%s1159_s24 + $0x38] sm:$0xff] (!%p797_p13) }
 0x130   : > { %535 = vst [vmem:[#allocation2] sm:$0xff] %v519_v3  ;;  %543 = vst [vmem:[#allocation2 + $0x40] sm:$0xff] %v527_v4  ;;  %v871_v9 = vpop.f32.mrb[2].mxu0  ;;  %v883_v10 = vpop.f32.mrb[2].mxu1 }
 0x131   : > { %v522_v11 = vadd.f32 %v871_v9, %v329_v5  ;;  %v530_v12 = vadd.f32 %v883_v10, %v337_v6  ;;  %v450_v13 = vpop.f32.mrb[3].mxu0  ;;  %v490_v14 = vpop.f32.mrb[3].mxu1  ;;  %v580_v5 = vld [vmem:[%s1159_s24 + $0x48] sm:$0xff] (!%p797_p13)  ;;  %v582_v10 = vld [vmem:[%s1159_s24 + $0x58] sm:$0xff] (!%p797_p13) }
 0x132   : > { %v521_v15 = vadd.f32 %v450_v13, %v328_v7  ;;  %v529_v16 = vadd.f32 %v490_v14, %v336_v8  ;;  %v581_v8 = vld [vmem:[%s1159_s24 + $0x50] sm:$0xff] (!%p797_p13)  ;;  %v583_v14 = vld [vmem:[%s1159_s24 + $0x60] sm:$0xff] (!%p797_p13) }
 0x133   : > { %538 = vst [vmem:[#allocation2 + $0x18] sm:$0xff] %v522_v11  ;;  %546 = vst [vmem:[#allocation2 + $0x58] sm:$0xff] %v530_v12 }
 0x134   : > { %537 = vst [vmem:[#allocation2 + $0x10] sm:$0xff] %v521_v15  ;;  %545 = vst [vmem:[#allocation2 + $0x50] sm:$0xff] %v529_v16  ;;  %v874_v21 = vpop.f32.mrb[4].mxu0  ;;  %v886_v22 = vpop.f32.mrb[4].mxu1 }
 0x135   : > { %v524_v23 = vadd.f32 %v874_v21, %v331_v17  ;;  %v532_v24 = vadd.f32 %v886_v22, %v339_v18  ;;  %v460_v25 = vpop.f32.mrb[5].mxu0  ;;  %v500_v26 = vpop.f32.mrb[5].mxu1  ;;  %v584_v17 = vld [vmem:[%s1159_s24 + $0x68] sm:$0xff] (!%p797_p13) }
 0x136   : > { %v523_v27 = vadd.f32 %v460_v25, %v330_v19  ;;  %v531_v28 = vadd.f32 %v500_v26, %v338_v20  ;;  %554 = sbr.rel (%p797_p13) target bundleno = 328 (0x148), region = 78  ;;  %v556_v43 = vld [vmem:[#allocation2 + $0x8] sm:$0xff] (!%p797_p13)  ;;  %v585_v19 = vld [vmem:[%s1159_s24 + $0x70] sm:$0xff] (!%p797_p13) }
 0x137   : > { %540 = vst [vmem:[#allocation2 + $0x28] sm:$0xff] %v524_v23  ;;  %548 = vst [vmem:[#allocation2 + $0x68] sm:$0xff] %v532_v24  ;;  %v555_v41 = vld [vmem:[#allocation2] sm:$0xff] (!%p797_p13)  ;;  %v588_v48 = vadd.f32 (!%p797_p13), %v572_v45, %v556_v43  ;;  %v564_v4 = vld [vmem:[#allocation2 + $0x48] sm:$0xff] (!%p797_p13) }
 0x138   : > { %539 = vst [vmem:[#allocation2 + $0x20] sm:$0xff] %v523_v27  ;;  %547 = vst [vmem:[#allocation2 + $0x60] sm:$0xff] %v531_v28  ;;  %v877_v33 = vpop.f32.mrb[6].mxu0  ;;  %v889_v34 = vpop.f32.mrb[6].mxu1  ;;  %v587_v44 = vadd.f32 (!%p797_p13), %v571_v42, %v555_v41  ;;  %v563_v0 = vld [vmem:[#allocation2 + $0x40] sm:$0xff] (!%p797_p13)  ;;  %v596_v7 = vadd.f32 (!%p797_p13), %v580_v5, %v564_v4  ;;  %v586_v23 = vld [vmem:[%s1159_s24 + $0x78] sm:$0xff] (!%p797_p13) }
 0x139   : > { %v526_v35 = vadd.f32 %v877_v33, %v333_v29  ;;  %v534_v36 = vadd.f32 %v889_v34, %v341_v30  ;;  %v470_v37 = vpop.f32.mrb[7].mxu0  ;;  %v510_v38 = vpop.f32.mrb[7].mxu1  ;;  %604 = vst [vmem:[#allocation2 + $0x8] sm:$0xff] (!%p797_p13), %v588_v48  ;;  %v595_v3 = vadd.f32 (!%p797_p13), %v579_v1, %v563_v0 }
 0x13a   : > { %v525_v39 = vadd.f32 %v470_v37, %v332_v31  ;;  %v533_v40 = vadd.f32 %v510_v38, %v340_v32  ;;  %v558_v50 = vld [vmem:[#allocation2 + $0x18] sm:$0xff] (!%p797_p13)  ;;  %603 = vst [vmem:[#allocation2] sm:$0xff] (!%p797_p13), %v587_v44  ;;  %612 = vst [vmem:[#allocation2 + $0x48] sm:$0xff] (!%p797_p13), %v596_v7 }
 0x13b   : > { %542 = vst [vmem:[#allocation2 + $0x38] sm:$0xff] %v526_v35  ;;  %550 = vst [vmem:[#allocation2 + $0x78] sm:$0xff] %v534_v36  ;;  %v557_v46 = vld [vmem:[#allocation2 + $0x10] sm:$0xff] (!%p797_p13)  ;;  %v590_v53 = vadd.f32 (!%p797_p13), %v574_v51, %v558_v50  ;;  %v566_v9 = vld [vmem:[#allocation2 + $0x58] sm:$0xff] (!%p797_p13) }
 0x13c   : > { %541 = vst [vmem:[#allocation2 + $0x30] sm:$0xff] %v525_v39  ;;  %549 = vst [vmem:[#allocation2 + $0x70] sm:$0xff] %v533_v40  ;;  %v589_v49 = vadd.f32 (!%p797_p13), %v573_v47, %v557_v46  ;;  %v565_v6 = vld [vmem:[#allocation2 + $0x50] sm:$0xff] (!%p797_p13)  ;;  %v598_v12 = vadd.f32 (!%p797_p13), %v582_v10, %v566_v9 }
 0x13d   : > { %606 = vst [vmem:[#allocation2 + $0x18] sm:$0xff] %v590_v53  ;;  %611 = vst [vmem:[#allocation2 + $0x40] sm:$0xff] %v595_v3  ;;  %v597_v11 = vadd.f32 %v581_v8, %v565_v6 }
 0x13e   : > { %v560_v55 = vld [vmem:[#allocation2 + $0x28] sm:$0xff]  ;;  %605 = vst [vmem:[#allocation2 + $0x10] sm:$0xff] %v589_v49  ;;  %614 = vst [vmem:[#allocation2 + $0x58] sm:$0xff] %v598_v12 }
 0x13f   : > { %v559_v52 = vld [vmem:[#allocation2 + $0x20] sm:$0xff]  ;;  %v592_v58 = vadd.f32 %v576_v56, %v560_v55  ;;  %v568_v15 = vld [vmem:[#allocation2 + $0x68] sm:$0xff]  ;;  %613 = vst [vmem:[#allocation2 + $0x50] sm:$0xff] %v597_v11 }
 0x140   : > { %v591_v57 = vadd.f32 %v575_v54, %v559_v52  ;;  %v567_v13 = vld [vmem:[#allocation2 + $0x60] sm:$0xff]  ;;  %v600_v20 = vadd.f32 %v584_v17, %v568_v15 }
 0x141   : > { %608 = vst [vmem:[#allocation2 + $0x28] sm:$0xff] %v592_v58  ;;  %v599_v16 = vadd.f32 %v583_v14, %v567_v13 }
 0x142   : > { %v562_v61 = vld [vmem:[#allocation2 + $0x38] sm:$0xff]  ;;  %607 = vst [vmem:[#allocation2 + $0x20] sm:$0xff] %v591_v57  ;;  %616 = vst [vmem:[#allocation2 + $0x68] sm:$0xff] %v600_v20 }
 0x143   : > { %v561_v59 = vld [vmem:[#allocation2 + $0x30] sm:$0xff]  ;;  %v594_v2 = vadd.f32 %v578_v63, %v562_v61  ;;  %v570_v22 = vld [vmem:[#allocation2 + $0x78] sm:$0xff]  ;;  %615 = vst [vmem:[#allocation2 + $0x60] sm:$0xff] %v599_v16 }
 0x144   : > { %v593_v62 = vadd.f32 %v577_v60, %v561_v59  ;;  %v569_v18 = vld [vmem:[#allocation2 + $0x70] sm:$0xff]  ;;  %v602_v24 = vadd.f32 %v586_v23, %v570_v22 }
 0x145   : > { %610 = vst [vmem:[#allocation2 + $0x38] sm:$0xff] %v594_v2  ;;  %v601_v21 = vadd.f32 %v585_v19, %v569_v18 }
 0x146   : > { %609 = vst [vmem:[#allocation2 + $0x30] sm:$0xff] %v593_v62  ;;  %618 = vst [vmem:[#allocation2 + $0x78] sm:$0xff] %v602_v24 }
 0x147   : > { %617 = vst [vmem:[#allocation2 + $0x70] sm:$0xff] %v601_v21 }
 0x148 PF: > { %p798_p0 = scmp.ne.s32.totalorder %s1034_s14, 2 }
 0x149   : > { %v799_v26 = vld [vmem:[%s1262_s2] ss:$0 sm:$0xff] (!%p798_p0)  ;;  %v625_v30 = vld [vmem:[#allocation2 + $0x10] sm:$0xff] (!%p798_p0)  ;;  %v628_v36 = vld [vmem:[#allocation2 + $0x28] sm:$0xff] (!%p798_p0) }
 0x14a   : > { %622 = sbr.rel (%p798_p0) target bundleno = 343 (0x157), region = 82  ;;  %v627_v32 = vld [vmem:[#allocation2 + $0x20] sm:$0xff] (!%p798_p0)  ;;  %v648_v33 = vadd.f32 (!%p798_p0), %v799_v26, %v625_v30  ;;  %v651_v41 = vadd.f32 (!%p798_p0), %v799_v26, %v628_v36  ;;  %v633_v45 = vld [vmem:[#allocation2 + $0x50] sm:$0xff] (!%p798_p0)  ;;  %v634_v50 = vld [vmem:[#allocation2 + $0x58] sm:$0xff] (!%p798_p0) }
 0x14b   : > { %v624_v27 = vld [vmem:[#allocation2 + $0x8] sm:$0xff] (!%p798_p0)  ;;  %v650_v35 = vadd.f32 (!%p798_p0), %v799_v26, %v627_v32  ;;  %v635_v51 = vld [vmem:[#allocation2 + $0x60] sm:$0xff] (!%p798_p0)  ;;  %v656_v60 = vadd.f32 (!%p798_p0), %v799_v26, %v633_v45  ;;  %v657_v61 = vadd.f32 (!%p798_p0), %v799_v26, %v634_v50 }
 0x14c   : > { %v623_v25 = vld [vmem:[#allocation2] sm:$0xff] (!%p798_p0)  ;;  %v647_v29 = vadd.f32 (!%p798_p0), %v799_v26, %v624_v27  ;;  %v632_v44 = vld [vmem:[#allocation2 + $0x48] sm:$0xff] (!%p798_p0)  ;;  %v664_v46 = vmax.f32 (!%p798_p0), %v648_v33, 0.0  ;;  %v667_v53 = vmax.f32 (!%p798_p0), %v651_v41, 0.0  ;;  %v658_v62 = vadd.f32 (!%p798_p0), %v799_v26, %v635_v51 }
 0x14d   : > { %v646_v28 = vadd.f32 (!%p798_p0), %v799_v26, %v623_v25  ;;  %v630_v38 = vld [vmem:[#allocation2 + $0x38] sm:$0xff] (!%p798_p0)  ;;  %v666_v48 = vmax.f32 (!%p798_p0), %v650_v35, 0.0  ;;  %v636_v52 = vld [vmem:[#allocation2 + $0x68] sm:$0xff] (!%p798_p0)  ;;  %v655_v56 = vadd.f32 (!%p798_p0), %v799_v26, %v632_v44  ;;  %v672_v3 = vmax.f32 (!%p798_p0), %v656_v60, 0.0 }
 0x14e   : > { %v629_v37 = vld [vmem:[#allocation2 + $0x30] sm:$0xff] (!%p798_p0)  ;;  %v663_v40 = vmax.f32 (!%p798_p0), %v647_v29, 0.0  ;;  %v653_v49 = vadd.f32 (!%p798_p0), %v799_v26, %v630_v38  ;;  %v638_v58 = vld [vmem:[#allocation2 + $0x78] sm:$0xff] (!%p798_p0)  ;;  %680 = vst [vmem:[%s1164_s29 + $0x10] sm:$0xff] (!%p798_p0), %v664_v46  ;;  %683 = vst [vmem:[%s1164_s29 + $0x28] sm:$0xff] (!%p798_p0), %v667_v53  ;;  %v659_v1 = vadd.f32 (!%p798_p0), %v799_v26, %v636_v52  ;;  %v673_v4 = vmax.f32 (!%p798_p0), %v657_v61, 0.0 }
 0x14f   : > { %v626_v31 = vld [vmem:[#allocation2 + $0x18] sm:$0xff] (!%p798_p0)  ;;  %v662_v39 = vmax.f32 (!%p798_p0), %v646_v28, 0.0  ;;  %v652_v42 = vadd.f32 (!%p798_p0), %v799_v26, %v629_v37  ;;  %v631_v43 = vld [vmem:[#allocation2 + $0x40] sm:$0xff] (!%p798_p0)  ;;  %v637_v57 = vld [vmem:[#allocation2 + $0x70] sm:$0xff] (!%p798_p0)  ;;  %682 = vst [vmem:[%s1164_s29 + $0x20] sm:$0xff] (!%p798_p0), %v666_v48  ;;  %v671_v0 = vmax.f32 (!%p798_p0), %v655_v56, 0.0  ;;  %v661_v6 = vadd.f32 (!%p798_p0), %v799_v26, %v638_v58 }
 0x150   : > { %v649_v34 = vadd.f32 (!%p798_p0), %v799_v26, %v626_v31  ;;  %679 = vst [vmem:[%s1164_s29 + $0x8] sm:$0xff] (!%p798_p0), %v663_v40  ;;  %v654_v55 = vadd.f32 (!%p798_p0), %v799_v26, %v631_v43  ;;  %v669_v59 = vmax.f32 (!%p798_p0), %v653_v49, 0.0  ;;  %v660_v2 = vadd.f32 (!%p798_p0), %v799_v26, %v637_v57  ;;  %688 = vst [vmem:[%s1164_s29 + $0x50] sm:$0xff] (!%p798_p0), %v672_v3 }
 0x151   : > { %678 = vst [vmem:[%s1164_s29] sm:$0xff] %v662_v39  ;;  %v668_v54 = vmax.f32 %v652_v42, 0.0  ;;  %v674_v5 = vmax.f32 %v658_v62, 0.0  ;;  %687 = vst [vmem:[%s1164_s29 + $0x48] sm:$0xff] %v671_v0  ;;  %v675_v7 = vmax.f32 %v659_v1, 0.0  ;;  %v677_v9 = vmax.f32 %v661_v6, 0.0 }
 0x152   : > { %v665_v47 = vmax.f32 %v649_v34, 0.0  ;;  %v670_v63 = vmax.f32 %v654_v55, 0.0  ;;  %685 = vst [vmem:[%s1164_s29 + $0x38] sm:$0xff] %v669_v59  ;;  %v676_v8 = vmax.f32 %v660_v2, 0.0  ;;  %689 = vst [vmem:[%s1164_s29 + $0x58] sm:$0xff] %v673_v4 }
 0x153   : > { %684 = vst [vmem:[%s1164_s29 + $0x30] sm:$0xff] %v668_v54  ;;  %690 = vst [vmem:[%s1164_s29 + $0x60] sm:$0xff] %v674_v5 }
 0x154   : > { %681 = vst [vmem:[%s1164_s29 + $0x18] sm:$0xff] %v665_v47  ;;  %686 = vst [vmem:[%s1164_s29 + $0x40] sm:$0xff] %v670_v63 }
 0x155   : > { %691 = vst [vmem:[%s1164_s29 + $0x68] sm:$0xff] %v675_v7  ;;  %692 = vst [vmem:[%s1164_s29 + $0x70] sm:$0xff] %v676_v8 }
 0x156   : > { %693 = vst [vmem:[%s1164_s29 + $0x78] sm:$0xff] %v677_v9 }
 0x157 PF: > { %s13_s18 = sadd.s32 1, %s1050_s18   ;;  %s1264_s12 = smov %s1030_s13 }
 0x158   : > { %p10_p1 = scmp.ge.s32.totalorder %s13_s18, 11   ;;  %s1265_s13 = smov %s1124_s25 }
 0x159   : > { %s1266_s14 = smov %s1042_s16  ;;  %s1267_s15 = smov %s1046_s17 }
 0x15a   : > { %s1268_s16 = smov %s1271_s19  ;;  %s1269_s17 = smov %s1275_s20 }
 0x15b   :  { %12 = sbr.rel (!%p10_p1) target bundleno = 4 (0x4), region = 120 }

</bundles_post_ra>
